<compile_context>
chip_gen: v7x
topology: tpu7x:2x2x1
jax: 0.10.0
libtpu: 0.0.40
codegen_flags: <defaults>
</compile_context>

<pallas_src>
import functools

import jax
import jax.numpy as jnp
from jax.experimental import pallas as pl
from jax.experimental.pallas import tpu as pltpu

LOG_STD_MAX = 2.0
LOG_STD_MIN = -5.0

HEAD_PAD = 128  # lane-dense fused-head output width (mean | log_std | zeros)


def _round_up(n, m):
    return ((n + m - 1) // m) * m


def equi_actor_kernel(x_ref, w1_ref, w2_ref, wh_ref, out_ref, *, act):
    """Whole EquiActor forward for one batch tile, fused in VMEM.

    x_ref   : (TB, OBS)       observation tile (matmul-operand dtype)
    w1_ref  : (OBS, HG)       fc1 weight  (in, out)
    w2_ref  : (HG,  HG)       fc2 weight
    wh_ref  : (HG,  HEAD_PAD) fused head weight [fc_mean | fc_logstd | 0-pad]
    out_ref : (TB, HEAD_PAD)  lane-dense output:
                              lanes [0, act)      -> mean
                              lanes [act, 2*act)  -> tanh-squashed+rescaled log_std
                              lanes [2*act, 128)  -> zeros (padding)
    """
    # fc1 + ReLU  (f32 accumulation; elementwise in f32)
    h = jnp.dot(x_ref[...], w1_ref[...], preferred_element_type=jnp.float32)
    h = jnp.maximum(h, 0.0)

    # fc2 + ReLU  (cast operand back to matmul dtype; identity when already f32)
    h = jnp.dot(h.astype(w2_ref.dtype), w2_ref[...],
                preferred_element_type=jnp.float32)
    h = jnp.maximum(h, 0.0)

    # fused heads: one MXU pass produces [mean | log_std_raw | pad]
    heads = jnp.dot(h.astype(wh_ref.dtype), wh_ref[...],
                    preferred_element_type=jnp.float32)

    # tanh + affine rescale, applied only to the log_std lanes
    squashed = LOG_STD_MIN + 0.5 * (LOG_STD_MAX - LOG_STD_MIN) * (jnp.tanh(heads) + 1.0)
    lane = jax.lax.broadcasted_iota(jnp.int32, heads.shape, 1)
    is_logstd = (lane >= act) & (lane < 2 * act)
    out = jnp.where(is_logstd, squashed, heads)

    out_ref[...] = out.astype(out_ref.dtype)


def prepare_equi_actor_weights(w1, w2, wm, wl, compute_dtype=jnp.float32):
    """ONE-TIME weight prep (hoisted out of the per-call forward path).

    Fuses the two 8-wide heads into one lane-dense (HG, 128) matrix and casts
    everything to the matmul-operand dtype.  compute_dtype=bfloat16 is valid
    on v5e/v6e/v7x (the MXU takes bf16 operands on all generations; all
    elementwise math inside the kernel stays f32).
    """
    act = wm.shape[1]
    assert wl.shape[1] == act and 2 * act <= HEAD_PAD
    wh = jnp.concatenate([wm, wl], axis=1)               # (HG, 2*ACT)
    wh = jnp.pad(wh, ((0, 0), (0, HEAD_PAD - 2 * act)))  # (HG, 128)
    cd = jnp.dtype(compute_dtype)
    return w1.astype(cd), w2.astype(cd), wh.astype(cd)


@functools.partial(jax.jit,
                   static_argnames=("act", "out_dtype", "max_tb", "num_cores"))
def equi_actor_forward(x, w1c, w2c, whc, *, act,
                       out_dtype=jnp.float32, max_tb=4096, num_cores=1):
    """Returns (mean, log_std), each (B, ACT) in out_dtype.

    x          : (B, OBS) observations (any float dtype; cast once to the
                 weight dtype for the MXU).
    w1c/w2c/whc: pre-fused, pre-cast weights from prepare_equi_actor_weights.
    out_dtype  : output element type.  bfloat16 keeps the 128-lane unmasked
                 store but halves HBM write traffic (large-batch win on
                 v5e/v6e); float32 for tight numerics.
    max_tb     : batch-tile cap.  Large tiles amortize the ~0.35 us/grid-step
                 overhead; VMEM is sized explicitly below.
    num_cores  : set 2 on v7x so large batches split into >=2 "parallel" grid
                 steps and shard across both TensorCores.
    """
    B, OBS = x.shape
    HG = w1c.shape[1]
    cd = w1c.dtype
    xc = x.astype(cd)

    # Batch tiling: bf16 packs 16 rows per vreg, f32 packs 8.
    row_align = 16 if cd == jnp.dtype(jnp.bfloat16) else 8
    min_tiles = max(1, num_cores)
    tb = _round_up(max(1, pl.cdiv(B, min_tiles)), row_align)
    tb = max(row_align, min(tb, max_tb))
    n_tiles = pl.cdiv(B, tb)
    Bp = n_tiles * tb
    if Bp != B:
        xc = jnp.pad(xc, ((0, Bp - B), (0, 0)))

    # Explicit scoped-VMEM budget: double-buffered x/out tiles, weights,
    # f32 activation headroom, + slack.  v5e's 16 MiB default would otherwise
    # cap the big-tile win; clamp to 64 MiB so we never exceed v7x physical.
    isz = lambda d: jnp.dtype(d).itemsize
    x_tile_b = tb * OBS * isz(cd)
    out_tile_b = tb * HEAD_PAD * isz(out_dtype)
    h_tile_b = tb * HG * 4
    w_bytes = (w1c.size + w2c.size + whc.size) * isz(cd)
    vmem_limit = 2 * (x_tile_b + out_tile_b) + 2 * w_bytes + 4 * h_tile_b + (4 << 20)
    vmem_limit = int(min(max(vmem_limit, 16 << 20), 64 << 20))

    full = lambda i: (0, 0)  # weights resident in VMEM, same block every step

    out = pl.pallas_call(
        functools.partial(equi_actor_kernel, act=act),
        out_shape=jax.ShapeDtypeStruct((Bp, HEAD_PAD), out_dtype),
        grid_spec=pltpu.PrefetchScalarGridSpec(
            num_scalar_prefetch=0,
            grid=(n_tiles,),
            in_specs=[
                pl.BlockSpec((tb, OBS), lambda i: (i, 0)),   # x tile
                pl.BlockSpec((OBS, HG), full),               # w1
                pl.BlockSpec((HG, HG), full),                # w2
                pl.BlockSpec((HG, HEAD_PAD), full),          # fused heads
            ],
            out_specs=pl.BlockSpec((tb, HEAD_PAD), lambda i: (i, 0)),
        ),
        compiler_params=pltpu.CompilerParams(
            dimension_semantics=("parallel",),
            vmem_limit_bytes=vmem_limit,
        ),
    )(xc, w1c, w2c, whc)

    mean = out[:B, :act]
    log_std = out[:B, act:2 * act]
    return mean, log_std


def _xavier(key, fan_in, fan_out):
    limit = jnp.sqrt(6.0 / (fan_in + fan_out))
    return jax.random.uniform(key, (fan_in, fan_out), jnp.float32, -limit, limit)


def _reference(x, w1, w2, wm, wl):
    h = jnp.maximum(x @ w1, 0.0)
    h = jnp.maximum(h @ w2, 0.0)
    mean = h @ wm
    log_std = jnp.tanh(h @ wl)
    log_std = LOG_STD_MIN + 0.5 * (LOG_STD_MAX - LOG_STD_MIN) * (log_std + 1.0)
    return mean, log_std


if __name__ == "__main__":
    # Small shapes consistent with the module:
    #   obs repr dim = 8, group size g = 4, hidden = 32 (-> hidden*g = 128),
    #   action repr dim = 8, batch = 16.
    B, OBS = 16, 8
    HIDDEN, G = 32, 4
    HG = HIDDEN * G          # 128 : flattened (channels * repr) width
    ACT = 8

    key = jax.random.PRNGKey(0)
    kx, k1, k2, km, kl, kx2 = jax.random.split(key, 6)

    x = jax.random.normal(kx, (B, OBS), jnp.float32)

    # Deterministic xavier-style init of the (pre-assembled) BasisLinear
    # weights; bias_init=False -> no bias terms.
    w1 = _xavier(k1, OBS, HG)     # fc1      : (1*OBS)    -> (HIDDEN*G)
    w2 = _xavier(k2, HG, HG)      # fc2      : (HIDDEN*G) -> (HIDDEN*G)
    wm = _xavier(km, HG, ACT)     # fc_mean  : (HIDDEN*G) -> (1*ACT)
    wl = _xavier(kl, HG, ACT)     # fc_logstd: (HIDDEN*G) -> (1*ACT)

    ref_mean, ref_log_std = _reference(x, w1, w2, wm, wl)

    # --- f32 operand path (tight tolerance), weights fused/cast ONCE ---
    w1c, w2c, whc = prepare_equi_actor_weights(w1, w2, wm, wl, jnp.float32)
    mean, log_std = equi_actor_forward(x, w1c, w2c, whc, act=ACT)
    jax.block_until_ready((mean, log_std))
    assert mean.shape == (B, ACT) and log_std.shape == (B, ACT)
    assert jnp.allclose(mean, ref_mean, atol=1e-5, rtol=1e-5)
    assert jnp.allclose(log_std, ref_log_std, atol=1e-5, rtol=1e-5)

    # --- ragged batch, multi-tile, two-core-style split (num_cores=2) ---
    B2 = 300
    x2 = jax.random.normal(kx2, (B2, OBS), jnp.float32)
    ref_mean2, ref_log_std2 = _reference(x2, w1, w2, wm, wl)
    mean2, log_std2 = equi_actor_forward(x2, w1c, w2c, whc, act=ACT,
                                         max_tb=128, num_cores=2)
    jax.block_until_ready((mean2, log_std2))
    assert mean2.shape == (B2, ACT) and log_std2.shape == (B2, ACT)
    assert jnp.allclose(mean2, ref_mean2, atol=1e-5, rtol=1e-5)
    assert jnp.allclose(log_std2, ref_log_std2, atol=1e-5, rtol=1e-5)

    # --- bf16 matmul operands + bf16 lane-dense output (valid on v5e/v6e/v7x;
    #     f32 accumulation + elementwise inside the kernel) ---
    w1b, w2b, whb = prepare_equi_actor_weights(w1, w2, wm, wl, jnp.bfloat16)
    mean_bf, log_std_bf = equi_actor_forward(x, w1b, w2b, whb, act=ACT,
                                             out_dtype=jnp.bfloat16)
    jax.block_until_ready((mean_bf, log_std_bf))
    assert jnp.allclose(mean_bf.astype(jnp.float32), ref_mean,
                        atol=5e-2, rtol=5e-2)
    assert jnp.allclose(log_std_bf.astype(jnp.float32), ref_log_std,
                        atol=5e-2, rtol=5e-2)

    print("KERNEL_OK")
</pallas_src>

<mosaic_0001>
module attributes {stable_mosaic.version = 11 : i64} {
  func.func @equi_actor_kernel(%arg0: i32, %arg1: memref<16x8xf32, #tpu.memory_space<vmem>>, %arg2: memref<8x128xf32, #tpu.memory_space<vmem>>, %arg3: memref<128x128xf32, #tpu.memory_space<vmem>>, %arg4: memref<128x128xf32, #tpu.memory_space<vmem>>, %arg5: memref<16x128xf32, #tpu.memory_space<vmem>>) attributes {dimension_semantics = [#tpu.dimension_semantics<parallel>], iteration_bounds = array<i64: 1>, scalar_prefetch = 0 : i64, scratch_operands = 0 : i64, tpu.core_type = #tpu.core_type<tc>, window_params = [{transform_indices = @transform_0, window_bounds = array<i64: 16, 8>}, {pipeline_mode = #tpu.pipeline_mode<synchronous>, transform_indices = @transform_1, window_bounds = array<i64: 8, 128>}, {pipeline_mode = #tpu.pipeline_mode<synchronous>, transform_indices = @transform_2, window_bounds = array<i64: 128, 128>}, {pipeline_mode = #tpu.pipeline_mode<synchronous>, transform_indices = @transform_3, window_bounds = array<i64: 128, 128>}, {transform_indices = @transform_4, window_bounds = array<i64: 16, 128>}]} {
    %c0 = arith.constant 0 : index
    %c0_0 = arith.constant 0 : index
    %0 = vector.load %arg1[%c0, %c0_0] : memref<16x8xf32, #tpu.memory_space<vmem>>, vector<16x8xf32>
    %c0_1 = arith.constant 0 : index
    %c0_2 = arith.constant 0 : index
    %1 = vector.load %arg2[%c0_1, %c0_2] : memref<8x128xf32, #tpu.memory_space<vmem>>, vector<8x128xf32>
    %cst = arith.constant dense<0.000000e+00> : vector<16x128xf32>
    %2 = tpu.matmul %0, %1, %cst {dimension_numbers = #tpu.dot_dimension_numbers<[1], [0], [0], [1], [0, 0, 1, 1], [], []>} : vector<16x8xf32>, vector<8x128xf32>, vector<16x128xf32> -> vector<16x128xf32>
    %cst_3 = arith.constant 0.000000e+00 : f32
    %3 = vector.broadcast %cst_3 : f32 to vector<16x128xf32>
    %4 = arith.maximumf %2, %3 : vector<16x128xf32>
    %c0_4 = arith.constant 0 : index
    %c0_5 = arith.constant 0 : index
    %5 = vector.load %arg3[%c0_4, %c0_5] : memref<128x128xf32, #tpu.memory_space<vmem>>, vector<128x128xf32>
    %cst_6 = arith.constant dense<0.000000e+00> : vector<16x128xf32>
    %6 = tpu.matmul %4, %5, %cst_6 {dimension_numbers = #tpu.dot_dimension_numbers<[1], [0], [0], [1], [0, 0, 1, 1], [], []>} : vector<16x128xf32>, vector<128x128xf32>, vector<16x128xf32> -> vector<16x128xf32>
    %cst_7 = arith.constant 0.000000e+00 : f32
    %7 = vector.broadcast %cst_7 : f32 to vector<16x128xf32>
    %8 = arith.maximumf %6, %7 : vector<16x128xf32>
    %c0_8 = arith.constant 0 : index
    %c0_9 = arith.constant 0 : index
    %9 = vector.load %arg4[%c0_8, %c0_9] : memref<128x128xf32, #tpu.memory_space<vmem>>, vector<128x128xf32>
    %cst_10 = arith.constant dense<0.000000e+00> : vector<16x128xf32>
    %10 = tpu.matmul %8, %9, %cst_10 {dimension_numbers = #tpu.dot_dimension_numbers<[1], [0], [0], [1], [0, 0, 1, 1], [], []>} : vector<16x128xf32>, vector<128x128xf32>, vector<16x128xf32> -> vector<16x128xf32>
    %11 = math.tanh %10 : vector<16x128xf32>
    %cst_11 = arith.constant 1.000000e+00 : f32
    %12 = vector.broadcast %cst_11 : f32 to vector<16x128xf32>
    %13 = arith.addf %11, %12 : vector<16x128xf32>
    %cst_12 = arith.constant 3.500000e+00 : f32
    %14 = vector.broadcast %cst_12 : f32 to vector<16x128xf32>
    %15 = arith.mulf %14, %13 : vector<16x128xf32>
    %cst_13 = arith.constant -5.000000e+00 : f32
    %16 = vector.broadcast %cst_13 : f32 to vector<16x128xf32>
    %17 = arith.addf %16, %15 : vector<16x128xf32>
    %18 = tpu.iota {dimensions = array<i32: 1>} : vector<16x128xi32>
    %c8_i32 = arith.constant 8 : i32
    %19 = vector.broadcast %c8_i32 : i32 to vector<16x128xi32>
    %20 = arith.cmpi sge, %18, %19 : vector<16x128xi32>
    %c16_i32 = arith.constant 16 : i32
    %21 = vector.broadcast %c16_i32 : i32 to vector<16x128xi32>
    %22 = arith.cmpi slt, %18, %21 : vector<16x128xi32>
    %23 = arith.andi %20, %22 : vector<16x128xi1>
    %24 = arith.select %23, %17, %10 : vector<16x128xi1>, vector<16x128xf32>
    %c0_14 = arith.constant 0 : index
    %c0_15 = arith.constant 0 : index
    %25 = vector.load %arg5[%c0_14, %c0_15] : memref<16x128xf32, #tpu.memory_space<vmem>>, vector<16x128xf32>
    tpu.vector_store %arg5[%c0_14, %c0_15], %24 {strides = array<i32>} : memref<16x128xf32, #tpu.memory_space<vmem>>, vector<16x128xf32>,
    return
  }
  func.func @transform_0(%arg0: i32) -> (i32, i32) {
    %c0_i32 = arith.constant 0 : i32
    %c0_i32_0 = arith.constant 0 : i32
    return %arg0, %c0_i32 : i32, i32
  }
  func.func @transform_1(%arg0: i32) -> (i32, i32) {
    %c0_i32 = arith.constant 0 : i32
    %c0_i32_0 = arith.constant 0 : i32
    %c0_i32_1 = arith.constant 0 : i32
    return %c0_i32, %c0_i32_0 : i32, i32
  }
  func.func @transform_2(%arg0: i32) -> (i32, i32) {
    %c0_i32 = arith.constant 0 : i32
    %c0_i32_0 = arith.constant 0 : i32
    %c0_i32_1 = arith.constant 0 : i32
    return %c0_i32, %c0_i32_0 : i32, i32
  }
  func.func @transform_3(%arg0: i32) -> (i32, i32) {
    %c0_i32 = arith.constant 0 : i32
    %c0_i32_0 = arith.constant 0 : i32
    %c0_i32_1 = arith.constant 0 : i32
    return %c0_i32, %c0_i32_0 : i32, i32
  }
  func.func @transform_4(%arg0: i32) -> (i32, i32) {
    %c0_i32 = arith.constant 0 : i32
    %c0_i32_0 = arith.constant 0 : i32
    return %arg0, %c0_i32 : i32, i32
  }
}

</mosaic_0001>

<bundles_post_ra>
// kernel: equi_actor_forward.1
= control target key start
LH: loop header
LB: loop body
LE: loop exit
PB: predicated region body
PF: predicated region fallthrough
CT: control target
= control target key end

     0   :  { %9 = vsyncpa [#allocation3], 0  ;;  %s643_s0 = inlined_call_operand.vmem [shape: f32[16,8], index: 0, kind: input, shape index: {}]   ;;  %s644_s1 = inlined_call_operand.vmem [shape: f32[8,128], index: 1, kind: input, shape index: {}]   ;;  %s645_s2 = inlined_call_operand.hbm [shape: f32[128,128], index: 2, kind: input, shape index: {}]   ;;  %s646_s3 = inlined_call_operand.hbm [shape: f32[128,128], index: 3, kind: input, shape index: {}]   ;;  %s647_s4 = inlined_call_operand.vmem [shape: f32[16,128], index: 4, kind: output, shape index: {}]  }
   0x1   :  { %10 = vsyncpa [#allocation5], 0  ;;  %s575_s15 = smov [#allocation2]   ;;  %s527_s19 = scalar_lea.hbm %s645_s2, 2048 }
   0x2   :  { %s20_s16 = sshll.u32 %s575_s15, 4  ;;  %p528_p0 = scmp.ne.s32.totalorder %s645_s2, %s527_s19  ;;  %s21_s16 = int_to_ptr.vmem [resolvable:$true] %s20_s16 }
   0x3   :  { %p531_p1 = scmp.lt.u32.totalorder %s527_s19, %s645_s2 }
   0x5   :  { %p533_p2 = pnand %p531_p1, %p528_p0 }
   0x7   :  { %536 = shalt.err (!%p533_p2)
}
   0x8   :  { %s537_s24 = scalar_lea.vmem %s21_s16, 2048  ;;  %p542_p4 = scmp.lt.s32.totalorder %s21_s16, %s21_s16 }
   0x9   :  { %p538_p3 = scmp.ne.s32.totalorder %s21_s16, %s537_s24  ;;  %p543_p5 = scmp.lt.s32.totalorder %s537_s24, %s537_s24 }
   0xb   :  { %p544_p6 = por %p543_p5, %p542_p4 }
   0xd   :  { %p545_p7 = pnand %p544_p6, %p538_p3 }
   0xf   :  { %548 = shalt.err (!%p545_p7)
}
  0x10   :  { %s576_s25 = smov 128   ;;  %s577_s26 = smov 8  }
  0x11   :  { %26 = dma.hbm_to_vmem [thread:$0]  %s645_s2, 2048, %s21_s16, [#allocation3], %s576_s25, %s576_s25, %s577_s26  }
  0x12   :  { %s578_s29 = smov [#allocation4]   ;;  %s549_s7 = scalar_lea.hbm %s646_s3, 2048 }
  0x13   :  { %s32_s30 = sshll.u32 %s578_s29, 4  ;;  %p550_p8 = scmp.ne.s32.totalorder %s646_s3, %s549_s7  ;;  %s33_s30 = int_to_ptr.vmem [resolvable:$true] %s32_s30 }
  0x14   :  { %p553_p9 = scmp.lt.u32.totalorder %s549_s7, %s646_s3 }
  0x16   :  { %p555_p10 = pnand %p553_p9, %p550_p8 }
  0x18   :  { %558 = shalt.err (!%p555_p10)
}
  0x19   :  { %s559_s12 = scalar_lea.vmem %s33_s30, 2048  ;;  %p564_p12 = scmp.lt.s32.totalorder %s33_s30, %s33_s30 }
  0x1a   :  { %p560_p11 = scmp.ne.s32.totalorder %s33_s30, %s559_s12  ;;  %p565_p13 = scmp.lt.s32.totalorder %s559_s12, %s559_s12 }
  0x1c   :  { %p566_p0 = por %p565_p13, %p564_p12 }
  0x1e   :  { %p567_p1 = pnand %p566_p0, %p560_p11 }
  0x20   :  { %570 = shalt.err (!%p567_p1)
}
  0x21   :  { %38 = dma.hbm_to_vmem [thread:$0]  %s646_s3, 2048, %s33_s30, [#allocation5], %s576_s25, %s576_s25, %s577_s26  }
  0x22   :  { %571 = dma.done.wait [#allocation3], 2048  }
  0x23   :  { %572 = vsyncadd [#allocation3], 4294965248 }
  0x24   :  { %573 = dma.done.wait [#allocation5], 2048  }
  0x25   :  { %574 = vsyncadd [#allocation5], 4294965248  ;;  %vm48_vm0 = vcmask 64512   ;;  %v47_v0 = vld [vmem:[%s644_s1] sm:$0xff]  ;;  %v46_v2 = vld [vmem:[%s643_s0 + $0x8] sm:$0xff]  ;;  %v324_v61 = vlaneseq }
  0x26   :  { %v45_v1 = vld [vmem:[%s643_s0] sm:$0xff]  ;;  %380 = vmatprep.subr.mxu0 %v47_v0  ;;  %v133_v4 = vld [vmem:[#allocation2 + $0x8] sm:$0xff]  ;;  %v134_v5 = vld [vmem:[#allocation2 + $0x10] sm:$0xff] }
  0x27   :  { %382 = vmatprep.mubr.msk.f32.mxu0 %vm48_vm0, %v45_v1  ;;  %v132_v3 = vld [vmem:[#allocation2] sm:$0xff]  ;;  %381 = vmatpush3.msra.mxu0 %v47_v0  ;;  %v135_v7 = vld [vmem:[#allocation2 + $0x18] sm:$0xff]  ;;  %v137_v10 = vld [vmem:[#allocation2 + $0x28] sm:$0xff]  ;;  %v325_v62 = vand.u32 127, %v324_v61 }
  0x28   :  { %v455_v6 = vpack.c.bf16 %v133_v4, %v132_v3  ;;  %383 = vmatmul.mubr.msk.f32.vlgmr.msra.gmra.mrb[0].mxu0 %vm48_vm0, %v46_v2  ;;  %v459_v8 = vpack.c.bf16 %v135_v7, %v134_v5  ;;  %v136_v9 = vld [vmem:[#allocation2 + $0x20] sm:$0xff]  ;;  %v138_v12 = vld [vmem:[#allocation2 + $0x30] sm:$0xff]  ;;  %v139_v13 = vld [vmem:[#allocation2 + $0x38] sm:$0xff] }
  0x29   :  { %v463_v11 = vpack.c.bf16 %v137_v10, %v136_v9  ;;  %v467_v14 = vpack.c.bf16 %v139_v13, %v138_v12  ;;  %v140_v15 = vld [vmem:[#allocation2 + $0x40] sm:$0xff]  ;;  %v141_v16 = vld [vmem:[#allocation2 + $0x48] sm:$0xff]  ;;  %v142_v18 = vld [vmem:[#allocation2 + $0x50] sm:$0xff]  ;;  %vm326_vm1 = vcmp.ge.s32.totalorder %v325_v62, 8  ;;  %vm327_vm2 = vcmp.lt.s32.totalorder %v325_v62, 16 }
  0x2a   :  { %456 = vmatprep.subr.bf16.mxu1 %v455_v6  ;;  %v471_v17 = vpack.c.bf16 %v141_v16, %v140_v15  ;;  %v143_v19 = vld [vmem:[#allocation2 + $0x58] sm:$0xff]  ;;  %v144_v21 = vld [vmem:[#allocation2 + $0x60] sm:$0xff]  ;;  %v145_v22 = vld [vmem:[#allocation2 + $0x68] sm:$0xff] }
  0x2b   :  { %458 = vmatpush3.bf16.msra.mxu1 %v455_v6  ;;  %v475_v20 = vpack.c.bf16 %v143_v19, %v142_v18  ;;  %v479_v23 = vpack.c.bf16 %v145_v22, %v144_v21  ;;  %v146_v24 = vld [vmem:[#allocation2 + $0x70] sm:$0xff]  ;;  %v147_v25 = vld [vmem:[#allocation2 + $0x78] sm:$0xff]  ;;  %v225_v27 = vld [vmem:[#allocation4] sm:$0xff] }
  0x2c   :  { %460 = vmatprep.subr.bf16.mxu1 %v459_v8  ;;  %v483_v26 = vpack.c.bf16 %v147_v25, %v146_v24  ;;  %v226_v28 = vld [vmem:[#allocation4 + $0x8] sm:$0xff]  ;;  %v227_v29 = vld [vmem:[#allocation4 + $0x10] sm:$0xff]  ;;  %v228_v31 = vld [vmem:[#allocation4 + $0x18] sm:$0xff] }
  0x2d   :  { %v487_v30 = vpack.c.bf16 %v226_v28, %v225_v27  ;;  %v491_v32 = vpack.c.bf16 %v228_v31, %v227_v29  ;;  %v229_v33 = vld [vmem:[#allocation4 + $0x20] sm:$0xff]  ;;  %v230_v34 = vld [vmem:[#allocation4 + $0x28] sm:$0xff]  ;;  %v231_v36 = vld [vmem:[#allocation4 + $0x30] sm:$0xff] }
  0x2e   :  { %v495_v35 = vpack.c.bf16 %v230_v34, %v229_v33  ;;  %v232_v37 = vld [vmem:[#allocation4 + $0x38] sm:$0xff]  ;;  %v233_v39 = vld [vmem:[#allocation4 + $0x40] sm:$0xff]  ;;  %v234_v40 = vld [vmem:[#allocation4 + $0x48] sm:$0xff] }
  0x2f   :  { %462 = vmatpush3.bf16.msra.mxu1 %v459_v8  ;;  %488 = vmatprep.subr.bf16.mxu0 %v487_v30  ;;  %v499_v38 = vpack.c.bf16 %v232_v37, %v231_v36  ;;  %v503_v41 = vpack.c.bf16 %v234_v40, %v233_v39  ;;  %v235_v42 = vld [vmem:[#allocation4 + $0x50] sm:$0xff]  ;;  %v236_v43 = vld [vmem:[#allocation4 + $0x58] sm:$0xff]  ;;  %v237_v45 = vld [vmem:[#allocation4 + $0x60] sm:$0xff] }
  0x30   :  { %464 = vmatprep.subr.bf16.mxu1 %v463_v11  ;;  %490 = vmatpush3.bf16.msra.mxu0 %v487_v30  ;;  %v507_v44 = vpack.c.bf16 %v236_v43, %v235_v42  ;;  %v238_v46 = vld [vmem:[#allocation4 + $0x68] sm:$0xff]  ;;  %v239_v52 = vld [vmem:[#allocation4 + $0x70] sm:$0xff]  ;;  %v240_v53 = vld [vmem:[#allocation4 + $0x78] sm:$0xff] }
  0x31   :  { %492 = vmatprep.subr.bf16.mxu0 %v491_v32  ;;  %v511_v47 = vpack.c.bf16 %v238_v46, %v237_v45  ;;  %v515_v54 = vpack.c.bf16 %v240_v53, %v239_v52  ;;  %vm328_vm3 = vmand %vm326_vm1, %vm327_vm2 }
  0x33   :  { %466 = vmatpush3.bf16.msra.mxu1 %v463_v11 }
  0x34   :  { %468 = vmatprep.subr.bf16.mxu1 %v467_v14  ;;  %494 = vmatpush3.bf16.msra.mxu0 %v491_v32 }
  0x35   :  { %496 = vmatprep.subr.bf16.mxu0 %v495_v35 }
  0x37   :  { %470 = vmatpush3.bf16.msra.mxu1 %v467_v14 }
  0x38   :  { %472 = vmatprep.subr.bf16.mxu1 %v471_v17  ;;  %498 = vmatpush3.bf16.msra.mxu0 %v495_v35 }
  0x39   :  { %500 = vmatprep.subr.bf16.mxu0 %v499_v38 }
  0x3b   :  { %474 = vmatpush3.bf16.msra.mxu1 %v471_v17 }
  0x3c   :  { %476 = vmatprep.subr.bf16.mxu1 %v475_v20  ;;  %502 = vmatpush3.bf16.msra.mxu0 %v499_v38 }
  0x3d   :  { %504 = vmatprep.subr.bf16.mxu0 %v503_v41 }
  0x3f   :  { %478 = vmatpush3.bf16.msra.mxu1 %v475_v20 }
  0x40   :  { %480 = vmatprep.subr.bf16.mxu1 %v479_v23  ;;  %506 = vmatpush3.bf16.msra.mxu0 %v503_v41 }
  0x41   :  { %508 = vmatprep.subr.bf16.mxu0 %v507_v44 }
  0x43   :  { %482 = vmatpush3.bf16.msra.mxu1 %v479_v23 }
  0x44   :  { %484 = vmatprep.subr.bf16.mxu1 %v483_v26  ;;  %510 = vmatpush3.bf16.msra.mxu0 %v507_v44 }
  0x45   :  { %512 = vmatprep.subr.bf16.mxu0 %v511_v47 }
  0x47   :  { %486 = vmatpush3.bf16.msra.mxu1 %v483_v26 }
  0x48   :  { %514 = vmatpush3.bf16.msra.mxu0 %v511_v47 }
  0x49   :  { %516 = vmatprep.subr.bf16.mxu0 %v515_v54 }
  0x4c   :  { %518 = vmatpush3.bf16.msra.mxu0 %v515_v54 }
  0xfb   :  { %v384_v48 = vpop.f32.mrb[0].mxu0 }
  0xfc   :  { %v121_v49 = vpop.f32.mrb[1].mxu0  ;;  %v131_v51 = vmax.f32 %v384_v48, 0.0 }
  0xfd   :  { %v130_v50 = vmax.f32 %v121_v49, 0.0 }
  0xff   :  { %417 = vmatprep.mubr.f32.mxu1 %v130_v50 }
 0x100   :  { %418 = vmatmul.mubr.f32.vlgmr.msra.gmra.mrb[0].mxu1 %v131_v51 }
 0x1d3   :  { %v419_v55 = vpop.f32.mrb[0].mxu1 }
 0x1d4   :  { %v214_v56 = vpop.f32.mrb[1].mxu1  ;;  %v224_v58 = vmax.f32 %v419_v55, 0.0 }
 0x1d5   :  { %v223_v57 = vmax.f32 %v214_v56, 0.0 }
 0x1d7   :  { %452 = vmatprep.mubr.f32.mxu0 %v223_v57 }
 0x1d8   :  { %453 = vmatmul.mubr.f32.vlgmr.msra.gmra.mrb[2].mxu0 %v224_v58 }
 0x2ab   :  { %v454_v59 = vpop.f32.mrb[2].mxu0 }
 0x2ac   :  { %523 = vtanh.f32 %v454_v59  ;;  %v307_v60 = vpop.f32.mrb[3].mxu0 }
 0x2ad   :  { %525 = vtanh.f32 %v307_v60 }
 0x2b6   :  { %v524_v63 = vpop.eup %523 }
 0x2b7   :  { %v526_v0 = vpop.eup %525  ;;  %v319_v1 = vadd.f32 1.0, %v524_v63 }
 0x2b8   :  { %v318_v2 = vadd.f32 1.0, %v526_v0 }
 0x2b9   :  { %v321_v3 = vmul.f32 3.5, %v319_v1 }
 0x2ba   :  { %v320_v4 = vmul.f32 3.5, %v318_v2 }
 0x2bb   :  { %v323_v5 = vadd.f32 -5.0, %v321_v3 }
 0x2bc   :  { %v322_v6 = vadd.f32 -5.0, %v320_v4 }
 0x2bd   :  { %v330_v7 = vsel %vm328_vm3, %v323_v5, %v454_v59 }
 0x2be   :  { %332 = vst [vmem:[%s647_s4 + $0x8] sm:$0xff] %v330_v7  ;;  %v329_v8 = vsel %vm328_vm3, %v322_v6, %v307_v60 }
 0x2bf   :  { %331 = vst [vmem:[%s647_s4] sm:$0xff] %v329_v8 }
 0x2c0   :  { %337 = vsyncpa [#allocation3], 1 }
 0x2c1   :  { %338 = vsyncpa [#allocation5], 1 }

</bundles_post_ra>
